<compile_context>
chip_gen: v7x
topology: tpu7x:2x2x1
jax: 0.10.0
libtpu: 0.0.40
codegen_flags: <defaults>
</compile_context>

<pallas_src>
import functools

import numpy as np
import jax
import jax.numpy as jnp
from jax.experimental import pallas as pl
from jax.experimental.pallas import tpu as pltpu


def _round_up(x: int, m: int) -> int:
    return ((x + m - 1) // m) * m


# ----------------------------------------------------------------------------
# Host-side 1-D interpolation matrices (glue, not hot path; cached per shape).
# ----------------------------------------------------------------------------
@functools.lru_cache(maxsize=None)
def bilinear_matrix(in_size: int, out_size: int):
    """M s.t. M @ x == F.interpolate(x, mode='bilinear', align_corners=False)."""
    dst = np.arange(out_size, dtype=np.float64)
    src = (dst + 0.5) * (in_size / out_size) - 0.5
    src = np.maximum(src, 0.0)                       # PyTorch clamps negative src to 0
    x0 = np.minimum(np.floor(src).astype(np.int64), in_size - 1)
    x1 = np.minimum(x0 + 1, in_size - 1)
    w1 = src - x0
    w0 = 1.0 - w1
    m = np.zeros((out_size, in_size), dtype=np.float64)
    np.add.at(m, (np.arange(out_size), x0), w0)
    np.add.at(m, (np.arange(out_size), x1), w1)
    return m


@functools.lru_cache(maxsize=None)
def nearest_matrix(in_size: int, out_size: int):
    """Selection matrix matching F.interpolate(..., mode='nearest') (legacy)."""
    src = np.minimum((np.arange(out_size) * (in_size / out_size)).astype(np.int64),
                     in_size - 1)
    m = np.zeros((out_size, in_size), dtype=np.float64)
    m[np.arange(out_size), src] = 1.0
    return m


@functools.lru_cache(maxsize=None)
def _fused_axis_matrix(in_size: int, up_size: int, crop_size: int, out_size: int):
    """nearest(out<-crop) o crop o bilinear(up<-in), composed into one (out, in)."""
    w_up = bilinear_matrix(in_size, up_size)         # (up, in)
    sel = nearest_matrix(crop_size, out_size)        # (out, crop) one-hot rows
    return (sel @ w_up[:crop_size, :]).astype(np.float32)   # (out, in)


# ----------------------------------------------------------------------------
# Pallas kernel: fused separable resize + logit-threshold, uint8 output.
# ----------------------------------------------------------------------------
def _make_kernel(g: int, logit_thresh: float):
    def kernel(x_ref, wh_ref, wwt_ref, o_ref):
        wh = wh_ref[...]                  # (h_pad, h_in)  f32   (hoisted out of loop)
        wwt = wwt_ref[...]                # (w_in, w_pad)  f32
        for gg in range(g):               # short static unroll over the mask group
            x = x_ref[gg]                 # (h_in, w_in)   f32
            # Lane-dense intermediate: keep w_out on the 128-lane axis.
            tmp = jnp.dot(x, wwt, preferred_element_type=jnp.float32)    # (h_in, w_pad)
            y = jnp.dot(wh, tmp, preferred_element_type=jnp.float32)     # (h_pad, w_pad)
            # sigmoid(y) > thr  <=>  y > logit(thr)   (monotone; no EUP work)
            o_ref[gg] = (y > logit_thresh).astype(jnp.uint8)
    return kernel


@functools.lru_cache(maxsize=None)
def _build_resize_call(n_pad, h_in, w_in, h_pad, w_pad, g, logit_thresh):
    kernel = _make_kernel(g, logit_thresh)
    return pl.pallas_call(
        kernel,
        out_shape=jax.ShapeDtypeStruct((n_pad, h_pad, w_pad), jnp.uint8),
        grid=(n_pad // g,),
        in_specs=[
            pl.BlockSpec((g, h_in, w_in), lambda i: (i, 0, 0)),
            pl.BlockSpec((h_pad, h_in), lambda i: (0, 0)),   # revisited block: no re-DMA
            pl.BlockSpec((w_in, w_pad), lambda i: (0, 0)),
        ],
        out_specs=pl.BlockSpec((g, h_pad, w_pad), lambda i: (i, 0, 0)),
        compiler_params=pltpu.CompilerParams(
            dimension_semantics=("parallel",),   # shards the mask grid over v7x's 2 TCs
            vmem_limit_bytes=32 * 1024 * 1024,
        ),
    )


def _pick_group(n_masks, h_in, w_in, h_pad, w_pad, budget_bytes=12 << 20):
    """Masks per grid step, sized so 2 pipeline buffers fit a conservative VMEM
    budget (safe on v7x's 64 MiB VMEM as well as v5e/v6e's 128 MiB)."""
    per_mask = (h_in * w_in * 4          # f32 input tile
                + h_pad * w_pad          # uint8 output tile
                + h_in * w_pad * 4       # f32 lane-dense intermediate
                + h_pad * w_pad * 4)     # f32 pre-threshold result
    g = min(16, n_masks, max(1, budget_bytes // max(1, 2 * per_mask)))
    return max(1, int(g))


def _resize_threshold_pallas(x, w_rows, w_cols, logit_thresh):
    """x: (N, h_in, w_in) logits -> uint8 (N, h_out, w_out) of
       [w_rows @ x @ w_cols^T > logit_thresh]."""
    n, h_in, w_in = x.shape
    h_out, w_out = w_rows.shape[0], w_cols.shape[0]
    h_pad = _round_up(h_out, 8)
    w_pad = _round_up(w_out, 128)        # lane-dense, unmasked stores

    g = _pick_group(n, h_in, w_in, h_pad, w_pad)
    n_pad = _round_up(n, g)

    x_f = jnp.asarray(x, jnp.float32)
    if n_pad != n:
        x_f = jnp.pad(x_f, ((0, n_pad - n), (0, 0), (0, 0)))

    wh_p = np.zeros((h_pad, h_in), np.float32)
    wh_p[:h_out] = w_rows
    wwt_p = np.zeros((w_in, w_pad), np.float32)
    wwt_p[:, :w_out] = np.asarray(w_cols).T

    call = _build_resize_call(n_pad, h_in, w_in, h_pad, w_pad, g,
                              float(logit_thresh))
    out = call(x_f,
               jnp.asarray(wh_p, jnp.float32),
               jnp.asarray(wwt_p, jnp.float32))
    return out[:n, :h_out, :w_out]


# ----------------------------------------------------------------------------
# Forward pass equivalent of PostProcessSegm.forward
# ----------------------------------------------------------------------------
def post_process_segm(results, outputs, orig_target_sizes, max_target_sizes,
                      threshold=0.5):
    orig_np = np.asarray(orig_target_sizes)
    max_np = np.asarray(max_target_sizes)
    assert len(orig_np) == len(max_np)
    max_h, max_w = (int(v) for v in max_np.max(axis=0))

    pred_masks = jnp.asarray(outputs["pred_masks"])           # [B, Q, H, W] logits
    b, q, h_in, w_in = pred_masks.shape
    logit_thresh = float(np.log(threshold / (1.0 - threshold)))

    # TODO(synk): per-image output shapes differ, so the loop over images stays
    #             host glue; each unique shape reuses a cached pallas_call.
    for i in range(b):
        img_h, img_w = int(max_np[i, 0]), int(max_np[i, 1])
        oh, ow = int(orig_np[i, 0]), int(orig_np[i, 1])
        # Fuse bilinear-upsample, crop and nearest-resize into one matrix pair
        # (exact: selection commutes with the pointwise threshold).
        wh = _fused_axis_matrix(h_in, max_h, img_h, oh)       # (oh, h_in)
        ww = _fused_axis_matrix(w_in, max_w, img_w, ow)       # (ow, w_in)
        masks = _resize_threshold_pallas(pred_masks[i], wh, ww, logit_thresh)
        results[i]["masks"] = masks[:, None, :, :]            # (Q, 1, oh, ow) uint8
    return results


# ----------------------------------------------------------------------------
if __name__ == "__main__":
    key = jax.random.PRNGKey(0)
    B, Q, H, W = 2, 4, 16, 16

    pred_masks = jax.random.normal(key, (B, Q, H, W), dtype=jnp.float32)
    outputs = {"pred_masks": pred_masks}
    results = [{} for _ in range(B)]

    max_target_sizes = jnp.array([[12, 14], [10, 16]], dtype=jnp.int32)
    orig_target_sizes = jnp.array([[24, 28], [20, 32]], dtype=jnp.int32)

    results = post_process_segm(results, outputs, orig_target_sizes,
                                max_target_sizes, threshold=0.5)

    max_np = np.asarray(max_target_sizes)
    orig_np = np.asarray(orig_target_sizes)
    max_h, max_w = (int(v) for v in max_np.max(axis=0))

    for i, r in enumerate(results):
        m = jax.block_until_ready(r["masks"])
        oh, ow = int(orig_np[i, 0]), int(orig_np[i, 1])
        assert m.shape == (Q, 1, oh, ow)
        assert m.dtype == jnp.uint8
        assert bool(jnp.all((m == 0) | (m == 1)))

        # Pure-JAX reference of the fused math; only require agreement where the
        # pre-threshold logit is not within float rounding distance of 0.
        img_h, img_w = int(max_np[i, 0]), int(max_np[i, 1])
        wh = jnp.asarray(_fused_axis_matrix(H, max_h, img_h, oh))
        ww = jnp.asarray(_fused_axis_matrix(W, max_w, img_w, ow))
        y_ref = jnp.einsum("oh,qhw,pw->qop", wh, pred_masks[i], ww)
        mask_ref = (y_ref > 0.0).astype(jnp.uint8)
        decisive = jnp.abs(y_ref) > 1e-3
        assert bool(jnp.all(jnp.where(decisive, m[:, 0] == mask_ref, True)))

    print("KERNEL_OK")
</pallas_src>

<mosaic_0001>
module attributes {stable_mosaic.version = 11 : i64} {
  func.func @kernel(%arg0: i32, %arg1: memref<4x16x16xf32, #tpu.memory_space<vmem>>, %arg2: memref<24x16xf32, #tpu.memory_space<vmem>>, %arg3: memref<16x128xf32, #tpu.memory_space<vmem>>, %arg4: memref<4x24x128xi8, #tpu.memory_space<vmem>>) attributes {dimension_semantics = [#tpu.dimension_semantics<parallel>], iteration_bounds = array<i64: 1>, scalar_prefetch = 0 : i64, scratch_operands = 0 : i64, tpu.core_type = #tpu.core_type<tc>, window_params = [{transform_indices = @transform_0, window_bounds = array<i64: 4, 16, 16>}, {pipeline_mode = #tpu.pipeline_mode<synchronous>, transform_indices = @transform_1, window_bounds = array<i64: 24, 16>}, {pipeline_mode = #tpu.pipeline_mode<synchronous>, transform_indices = @transform_2, window_bounds = array<i64: 16, 128>}, {transform_indices = @transform_3, window_bounds = array<i64: 4, 24, 128>}]} {
    %c0 = arith.constant 0 : index
    %c0_0 = arith.constant 0 : index
    %0 = vector.load %arg2[%c0, %c0_0] : memref<24x16xf32, #tpu.memory_space<vmem>>, vector<24x16xf32>
    %c0_1 = arith.constant 0 : index
    %c0_2 = arith.constant 0 : index
    %1 = vector.load %arg3[%c0_1, %c0_2] : memref<16x128xf32, #tpu.memory_space<vmem>>, vector<16x128xf32>
    %c0_3 = arith.constant 0 : index
    %c0_4 = arith.constant 0 : index
    %c0_5 = arith.constant 0 : index
    %2 = vector.load %arg1[%c0_3, %c0_4, %c0_5] : memref<4x16x16xf32, #tpu.memory_space<vmem>>, vector<1x16x16xf32>
    %3 = vector.shape_cast %2 : vector<1x16x16xf32> to vector<16x16xf32>
    %cst = arith.constant dense<0.000000e+00> : vector<16x128xf32>
    %4 = tpu.matmul %3, %1, %cst {dimension_numbers = #tpu.dot_dimension_numbers<[1], [0], [0], [1], [0, 0, 1, 1], [], []>} : vector<16x16xf32>, vector<16x128xf32>, vector<16x128xf32> -> vector<16x128xf32>
    %cst_6 = arith.constant dense<0.000000e+00> : vector<24x128xf32>
    %5 = tpu.matmul %0, %4, %cst_6 {dimension_numbers = #tpu.dot_dimension_numbers<[1], [0], [0], [1], [0, 0, 1, 1], [], []>} : vector<24x16xf32>, vector<16x128xf32>, vector<24x128xf32> -> vector<24x128xf32>
    %cst_7 = arith.constant 0.000000e+00 : f32
    %6 = vector.broadcast %cst_7 : f32 to vector<24x128xf32>
    %7 = arith.cmpf ogt, %5, %6 : vector<24x128xf32>
    %8 = arith.extui %7 : vector<24x128xi1> to vector<24x128xi8>
    %c0_8 = arith.constant 0 : index
    %c0_9 = arith.constant 0 : index
    %c0_10 = arith.constant 0 : index
    %9 = vector.load %arg4[%c0_8, %c0_9, %c0_10] : memref<4x24x128xi8, #tpu.memory_space<vmem>>, vector<1x24x128xi8>
    %10 = vector.shape_cast %9 : vector<1x24x128xi8> to vector<24x128xi8>
    %11 = vector.shape_cast %8 : vector<24x128xi8> to vector<1x24x128xi8>
    tpu.vector_store %arg4[%c0_8, %c0_9, %c0_10], %11 {strides = array<i32>} : memref<4x24x128xi8, #tpu.memory_space<vmem>>, vector<1x24x128xi8>,
    %c1 = arith.constant 1 : index
    %c0_11 = arith.constant 0 : index
    %c0_12 = arith.constant 0 : index
    %12 = vector.load %arg1[%c1, %c0_11, %c0_12] : memref<4x16x16xf32, #tpu.memory_space<vmem>>, vector<1x16x16xf32>
    %13 = vector.shape_cast %12 : vector<1x16x16xf32> to vector<16x16xf32>
    %cst_13 = arith.constant dense<0.000000e+00> : vector<16x128xf32>
    %14 = tpu.matmul %13, %1, %cst_13 {dimension_numbers = #tpu.dot_dimension_numbers<[1], [0], [0], [1], [0, 0, 1, 1], [], []>} : vector<16x16xf32>, vector<16x128xf32>, vector<16x128xf32> -> vector<16x128xf32>
    %cst_14 = arith.constant dense<0.000000e+00> : vector<24x128xf32>
    %15 = tpu.matmul %0, %14, %cst_14 {dimension_numbers = #tpu.dot_dimension_numbers<[1], [0], [0], [1], [0, 0, 1, 1], [], []>} : vector<24x16xf32>, vector<16x128xf32>, vector<24x128xf32> -> vector<24x128xf32>
    %cst_15 = arith.constant 0.000000e+00 : f32
    %16 = vector.broadcast %cst_15 : f32 to vector<24x128xf32>
    %17 = arith.cmpf ogt, %15, %16 : vector<24x128xf32>
    %18 = arith.extui %17 : vector<24x128xi1> to vector<24x128xi8>
    %c1_16 = arith.constant 1 : index
    %c0_17 = arith.constant 0 : index
    %c0_18 = arith.constant 0 : index
    %19 = vector.load %arg4[%c1_16, %c0_17, %c0_18] : memref<4x24x128xi8, #tpu.memory_space<vmem>>, vector<1x24x128xi8>
    %20 = vector.shape_cast %19 : vector<1x24x128xi8> to vector<24x128xi8>
    %21 = vector.shape_cast %18 : vector<24x128xi8> to vector<1x24x128xi8>
    tpu.vector_store %arg4[%c1_16, %c0_17, %c0_18], %21 {strides = array<i32>} : memref<4x24x128xi8, #tpu.memory_space<vmem>>, vector<1x24x128xi8>,
    %c2 = arith.constant 2 : index
    %c0_19 = arith.constant 0 : index
    %c0_20 = arith.constant 0 : index
    %22 = vector.load %arg1[%c2, %c0_19, %c0_20] : memref<4x16x16xf32, #tpu.memory_space<vmem>>, vector<1x16x16xf32>
    %23 = vector.shape_cast %22 : vector<1x16x16xf32> to vector<16x16xf32>
    %cst_21 = arith.constant dense<0.000000e+00> : vector<16x128xf32>
    %24 = tpu.matmul %23, %1, %cst_21 {dimension_numbers = #tpu.dot_dimension_numbers<[1], [0], [0], [1], [0, 0, 1, 1], [], []>} : vector<16x16xf32>, vector<16x128xf32>, vector<16x128xf32> -> vector<16x128xf32>
    %cst_22 = arith.constant dense<0.000000e+00> : vector<24x128xf32>
    %25 = tpu.matmul %0, %24, %cst_22 {dimension_numbers = #tpu.dot_dimension_numbers<[1], [0], [0], [1], [0, 0, 1, 1], [], []>} : vector<24x16xf32>, vector<16x128xf32>, vector<24x128xf32> -> vector<24x128xf32>
    %cst_23 = arith.constant 0.000000e+00 : f32
    %26 = vector.broadcast %cst_23 : f32 to vector<24x128xf32>
    %27 = arith.cmpf ogt, %25, %26 : vector<24x128xf32>
    %28 = arith.extui %27 : vector<24x128xi1> to vector<24x128xi8>
    %c2_24 = arith.constant 2 : index
    %c0_25 = arith.constant 0 : index
    %c0_26 = arith.constant 0 : index
    %29 = vector.load %arg4[%c2_24, %c0_25, %c0_26] : memref<4x24x128xi8, #tpu.memory_space<vmem>>, vector<1x24x128xi8>
    %30 = vector.shape_cast %29 : vector<1x24x128xi8> to vector<24x128xi8>
    %31 = vector.shape_cast %28 : vector<24x128xi8> to vector<1x24x128xi8>
    tpu.vector_store %arg4[%c2_24, %c0_25, %c0_26], %31 {strides = array<i32>} : memref<4x24x128xi8, #tpu.memory_space<vmem>>, vector<1x24x128xi8>,
    %c3 = arith.constant 3 : index
    %c0_27 = arith.constant 0 : index
    %c0_28 = arith.constant 0 : index
    %32 = vector.load %arg1[%c3, %c0_27, %c0_28] : memref<4x16x16xf32, #tpu.memory_space<vmem>>, vector<1x16x16xf32>
    %33 = vector.shape_cast %32 : vector<1x16x16xf32> to vector<16x16xf32>
    %cst_29 = arith.constant dense<0.000000e+00> : vector<16x128xf32>
    %34 = tpu.matmul %33, %1, %cst_29 {dimension_numbers = #tpu.dot_dimension_numbers<[1], [0], [0], [1], [0, 0, 1, 1], [], []>} : vector<16x16xf32>, vector<16x128xf32>, vector<16x128xf32> -> vector<16x128xf32>
    %cst_30 = arith.constant dense<0.000000e+00> : vector<24x128xf32>
    %35 = tpu.matmul %0, %34, %cst_30 {dimension_numbers = #tpu.dot_dimension_numbers<[1], [0], [0], [1], [0, 0, 1, 1], [], []>} : vector<24x16xf32>, vector<16x128xf32>, vector<24x128xf32> -> vector<24x128xf32>
    %cst_31 = arith.constant 0.000000e+00 : f32
    %36 = vector.broadcast %cst_31 : f32 to vector<24x128xf32>
    %37 = arith.cmpf ogt, %35, %36 : vector<24x128xf32>
    %38 = arith.extui %37 : vector<24x128xi1> to vector<24x128xi8>
    %c3_32 = arith.constant 3 : index
    %c0_33 = arith.constant 0 : index
    %c0_34 = arith.constant 0 : index
    %39 = vector.load %arg4[%c3_32, %c0_33, %c0_34] : memref<4x24x128xi8, #tpu.memory_space<vmem>>, vector<1x24x128xi8>
    %40 = vector.shape_cast %39 : vector<1x24x128xi8> to vector<24x128xi8>
    %41 = vector.shape_cast %38 : vector<24x128xi8> to vector<1x24x128xi8>
    tpu.vector_store %arg4[%c3_32, %c0_33, %c0_34], %41 {strides = array<i32>} : memref<4x24x128xi8, #tpu.memory_space<vmem>>, vector<1x24x128xi8>,
    return
  }
  func.func @transform_0(%arg0: i32) -> (i32, i32, i32) {
    %c0_i32 = arith.constant 0 : i32
    %c0_i32_0 = arith.constant 0 : i32
    %c0_i32_1 = arith.constant 0 : i32
    return %arg0, %c0_i32, %c0_i32_0 : i32, i32, i32
  }
  func.func @transform_1(%arg0: i32) -> (i32, i32) {
    %c0_i32 = arith.constant 0 : i32
    %c0_i32_0 = arith.constant 0 : i32
    %c0_i32_1 = arith.constant 0 : i32
    return %c0_i32, %c0_i32_0 : i32, i32
  }
  func.func @transform_2(%arg0: i32) -> (i32, i32) {
    %c0_i32 = arith.constant 0 : i32
    %c0_i32_0 = arith.constant 0 : i32
    %c0_i32_1 = arith.constant 0 : i32
    return %c0_i32, %c0_i32_0 : i32, i32
  }
  func.func @transform_3(%arg0: i32) -> (i32, i32, i32) {
    %c0_i32 = arith.constant 0 : i32
    %c0_i32_0 = arith.constant 0 : i32
    %c0_i32_1 = arith.constant 0 : i32
    return %arg0, %c0_i32, %c0_i32_0 : i32, i32, i32
  }
}

</mosaic_0001>

<bundles_post_ra>
// kernel: tpu_custom_call.1
= control target key start
LH: loop header
LB: loop body
LE: loop exit
PB: predicated region body
PF: predicated region fallthrough
CT: control target
= control target key end

     0   :  { %8 = vsyncpa [#allocation3], 0  ;;  %s1166_s0 = inlined_call_operand.hbm [shape: f32[4,16,16], index: 0, kind: input, shape index: {}]   ;;  %s1167_s1 = inlined_call_operand.vmem [shape: f32[24,16], index: 1, kind: input, shape index: {}]   ;;  %s1168_s2 = inlined_call_operand.vmem [shape: f32[16,128], index: 2, kind: input, shape index: {}]   ;;  %s1169_s3 = inlined_call_operand.hbm [shape: u8[4,24,128], index: 3, kind: output, shape index: {}]  }
   0x1   :  { %9 = vsyncpa [#allocation4], 0  ;;  %s1019_s12 = smov [#allocation2]   ;;  %s971_s16 = scalar_lea.hbm %s1166_s0, 1024 }
   0x2   :  { %s15_s13 = sshll.u32 %s1019_s12, 4  ;;  %p972_p0 = scmp.ne.s32.totalorder %s1166_s0, %s971_s16  ;;  %s16_s13 = int_to_ptr.vmem [resolvable:$true] %s15_s13 }
   0x3   :  { %p975_p1 = scmp.lt.u32.totalorder %s971_s16, %s1166_s0 }
   0x5   :  { %p977_p2 = pnand %p975_p1, %p972_p0 }
   0x7   :  { %980 = shalt.err (!%p977_p2)
}
   0x8   :  { %s981_s21 = scalar_lea.vmem %s16_s13, 1024  ;;  %p986_p4 = scmp.lt.s32.totalorder %s16_s13, %s16_s13 }
   0x9   :  { %p982_p3 = scmp.ne.s32.totalorder %s16_s13, %s981_s21  ;;  %p987_p5 = scmp.lt.s32.totalorder %s981_s21, %s981_s21 }
   0xb   :  { %p988_p6 = por %p987_p5, %p986_p4 }
   0xd   :  { %p989_p7 = pnand %p988_p6, %p982_p3 }
   0xf   :  { %992 = shalt.err (!%p989_p7)
}
  0x10   :  { %s1020_s22 = smov 128   ;;  %s1021_s23 = smov 8  }
  0x11   :  { %21 = dma.hbm_to_vmem [thread:$0]  %s1166_s0, 1024, %s16_s13, [#allocation3], %s1020_s22, %s1020_s22, %s1021_s23  }
  0x12   :  { %1015 = dma.done.wait [#allocation3], 1024  }
  0x13   :  { %1016 = vsyncadd [#allocation3], 4294966272  ;;  %vm38_vm0 = vcmask 130048   ;;  %v34_v0 = vld [vmem:[%s1168_s2] sm:$0xff]  ;;  %v35_v1 = vld [vmem:[%s1168_s2 + $0x8] sm:$0xff]  ;;  %v1022_v7 = vmov 0.0|0.0  }
  0x14   :  { %v36_v2 = vld [vmem:[#allocation2] sm:$0xff]  ;;  %v933_v3 = vpack.c.bf16 %v35_v1, %v34_v0  ;;  %v229_v4 = vld [vmem:[#allocation2 + $0x10] sm:$0xff]  ;;  %v37_v5 = vld [vmem:[#allocation2 + $0x8] sm:$0xff]  ;;  %vm1023_vm1 = vmmov 0   ;;  %v1024_v8 = vmov 0.0   ;;  %v1025_v35 = vmov 0  }
  0x15   :  { %857 = vmatprep.mubr.msk.f32.mxu1 %vm38_vm0, %v36_v2  ;;  %877 = vmatprep.mubr.msk.f32.mxu0 %vm38_vm0, %v229_v4  ;;  %v230_v6 = vld [vmem:[#allocation2 + $0x18] sm:$0xff]  ;;  %v1078_v15 = vld [vmem:[%s1167_s1] sm:$0xff]  ;;  %v1087_v16 = vld [vmem:[%s1167_s1 + $0x8] sm:$0xff] }
  0x16   :  { %934 = vmatprep.subr.bf16.mxu1 %v933_v3  ;;  %941 = vmatprep.subr.bf16.mxu0 %v933_v3  ;;  %v1104_v17 = vld [vmem:[%s1167_s1 + $0x10] sm:$0xff]  ;;  %v413_v18 = vld [vmem:[#allocation2 + $0x20] sm:$0xff]  ;;  %v414_v20 = vld [vmem:[#allocation2 + $0x28] sm:$0xff]  ;;  %s1026_s1 = smov [#allocation5]  }
  0x17   :  { %936 = vmatpush3.bf16.msra.mxu1 %v933_v3  ;;  %943 = vmatpush3.bf16.msra.mxu0 %v933_v3  ;;  %v597_v19 = vld [vmem:[#allocation2 + $0x30] sm:$0xff]  ;;  %v598_v21 = vld [vmem:[#allocation2 + $0x38] sm:$0xff]  ;;  %s785_s7 = sshll.u32 %s1026_s1, 4  ;;  %s786_s7 = int_to_ptr.vmem [resolvable:$true] %s785_s7 }
  0x18   :  { %937 = vmatprep.subr.bf16.mxu1 %v1022_v7  ;;  %944 = vmatprep.subr.bf16.mxu0 %v1022_v7  ;;  %s993_s8 = scalar_lea.vmem %s786_s7, 384  ;;  %p998_p9 = scmp.lt.s32.totalorder %s786_s7, %s786_s7 }
  0x19   :  { %p994_p8 = scmp.ne.s32.totalorder %s786_s7, %s993_s8  ;;  %p999_p10 = scmp.lt.s32.totalorder %s993_s8, %s993_s8 }
  0x1a   :  { %858 = vmatmul.mubr.msk.f32.vlgmr.msra.gmra.mrb[0].mxu1 %vm38_vm0, %v37_v5  ;;  %878 = vmatmul.mubr.msk.f32.vlgmr.msra.gmra.mrb[0].mxu0 %vm38_vm0, %v230_v6 }
  0x1b   :  { %864 = vmatprep.mubr.msk.f32.mxu1 %vm1023_vm1, %v1024_v8  ;;  %884 = vmatprep.mubr.msk.f32.mxu0 %vm1023_vm1, %v1024_v8  ;;  %p1000_p11 = por %p999_p10, %p998_p9 }
  0x1d   :  { %p1001_p12 = pnand %p1000_p11, %p994_p8 }
  0xed   :  { %v859_v9 = vpop.f32.mrb[0].mxu1  ;;  %v879_v10 = vpop.f32.mrb[0].mxu0 }
  0xee   :  { %v111_v11 = vpop.f32.mrb[1].mxu1  ;;  %v303_v12 = vpop.f32.mrb[1].mxu0 }
  0xef   :  { %v938_v13 = vpack.c.bf16 %v859_v9, %v111_v11  ;;  %v945_v14 = vpack.c.bf16 %v879_v10, %v303_v12 }
  0xf1   :  { %939 = vmatpush3.bf16.msra.mxu1 %v938_v13  ;;  %946 = vmatpush3.bf16.msra.mxu0 %v945_v14 }
  0xf2   :  { %948 = vmatprep.subr.bf16.mxu1 %v933_v3  ;;  %955 = vmatprep.subr.bf16.mxu0 %v933_v3 }
  0xf4   :  { %865 = vmatmul.mubr.msk.f32.vlgmr.msra.gmra.mrb[2].mxu1 %vm38_vm0, %v1078_v15  ;;  %885 = vmatmul.mubr.msk.f32.vlgmr.msra.gmra.mrb[2].mxu0 %vm38_vm0, %v1078_v15 }
  0xf5   :  { %950 = vmatpush3.bf16.msra.mxu1 %v933_v3  ;;  %957 = vmatpush3.bf16.msra.mxu0 %v933_v3 }
  0xf6   :  { %867 = vmatprep.mubr.msk.f32.mxu1 %vm1023_vm1, %v1024_v8  ;;  %887 = vmatprep.mubr.msk.f32.mxu0 %vm1023_vm1, %v1024_v8 }
  0xf7   :  { %951 = vmatprep.subr.bf16.mxu1 %v1022_v7  ;;  %958 = vmatprep.subr.bf16.mxu0 %v1022_v7 }
  0xf8   :  { %868 = vmatmul.mubr.msk.f32.gmra.mrb[4].mxu1 %vm38_vm0, %v1087_v16  ;;  %888 = vmatmul.mubr.msk.f32.gmra.mrb[4].mxu0 %vm38_vm0, %v1087_v16 }
  0xf9   :  { %870 = vmatprep.mubr.msk.f32.mxu1 %vm1023_vm1, %v1024_v8  ;;  %890 = vmatprep.mubr.msk.f32.mxu0 %vm1023_vm1, %v1024_v8 }
  0xfc   :  { %871 = vmatmul.mubr.msk.f32.gmra.mrb[6].mxu1 %vm38_vm0, %v1104_v17  ;;  %891 = vmatmul.mubr.msk.f32.gmra.mrb[6].mxu0 %vm38_vm0, %v1104_v17 }
  0xfd   :  { %897 = vmatprep.mubr.msk.f32.mxu1 %vm38_vm0, %v413_v18  ;;  %917 = vmatprep.mubr.msk.f32.mxu0 %vm38_vm0, %v597_v19 }
 0x100   :  { %898 = vmatmul.mubr.msk.f32.vlgmr.msra.gmra.mrb[8].mxu1 %vm38_vm0, %v414_v20  ;;  %918 = vmatmul.mubr.msk.f32.vlgmr.msra.gmra.mrb[8].mxu0 %vm38_vm0, %v598_v21 }
 0x101   :  { %904 = vmatprep.mubr.msk.f32.mxu1 %vm1023_vm1, %v1024_v8  ;;  %924 = vmatprep.mubr.msk.f32.mxu0 %vm1023_vm1, %v1024_v8 }
 0x1c7   :  { %v195_v22 = vpop.f32.mrb[2].mxu1  ;;  %v378_v23 = vpop.f32.mrb[2].mxu0 }
 0x1c8   :  { %v866_v24 = vpop.f32.mrb[3].mxu1  ;;  %v886_v25 = vpop.f32.mrb[3].mxu0  ;;  %vm209_vm2 = vcmp.gt.f32.partialorder %v195_v22, 0.0  ;;  %vm392_vm5 = vcmp.gt.f32.partialorder %v378_v23, 0.0 }
 0x1cb   :  { %v200_v26 = vpop.f32.mrb[4].mxu1  ;;  %v383_v27 = vpop.f32.mrb[4].mxu0 }
 0x1cc   :  { %vm210_vm3 = vcmp.gt.f32.partialorder %v200_v26, 0.0  ;;  %vm393_vm4 = vcmp.gt.f32.partialorder %v383_v27, 0.0  ;;  %v869_v28 = vpop.f32.mrb[5].mxu1  ;;  %v889_v29 = vpop.f32.mrb[5].mxu0 }
 0x1cd   :  { %vm212_vm6 = vmpackc.low %vm210_vm3, %vm209_vm2 }
 0x1ce   :  { %vm1118_vm7 = vmpackc.low %vm393_vm4, %vm392_vm5 }
 0x1cf   :  { %v205_v31 = vpop.f32.mrb[6].mxu1  ;;  %v388_v32 = vpop.f32.mrb[6].mxu0 }
 0x1d0   :  { %vm211_vm8 = vcmp.gt.f32.partialorder %v205_v31, 0.0  ;;  %vm394_vm9 = vcmp.gt.f32.partialorder %v388_v32, 0.0  ;;  %v872_v33 = vpop.f32.mrb[7].mxu1  ;;  %v892_v34 = vpop.f32.mrb[7].mxu0 }
 0x1d1   :  { %vm213_vm10 = vmpackc.low %vm211_vm8, %vm211_vm8 }
 0x1d2   :  { %vm214_vm11 = vmpackc.even %vm213_vm10, %vm212_vm6 }
 0x1d3   :  { %v215_v36 = vsel %vm214_vm11, 16843009, %v1025_v35  ;;  %vm396_vm12 = vmpackc.low %vm394_vm9, %vm394_vm9  ;;  %v899_v37 = vpop.f32.mrb[8].mxu1  ;;  %v919_v38 = vpop.f32.mrb[8].mxu0 }
 0x1d4   :  { %v216_v39 = vunpack.c.0.s8 %v215_v36  ;;  %v217_v40 = vunpack.c.1.s8 %v215_v36  ;;  %v218_v41 = vunpack.c.2.s8 %v215_v36  ;;  %vm397_vm13 = vmpackc.even %vm396_vm12, %vm1118_vm7  ;;  %v487_v42 = vpop.f32.mrb[9].mxu1  ;;  %v671_v43 = vpop.f32.mrb[9].mxu0 }
 0x1d5   :  { %v398_v44 = vsel %vm397_vm13, 16843009, %v1025_v35  ;;  %v952_v45 = vpack.c.bf16 %v899_v37, %v487_v42  ;;  %v959_v46 = vpack.c.bf16 %v919_v38, %v671_v43 }
 0x1d6   :  { %v219_v47 = vpack.c.b16 %v216_v39, %v216_v39  ;;  %v221_v48 = vpack.c.b16 %v217_v40, %v217_v40  ;;  %v223_v49 = vpack.c.b16 %v218_v41, %v218_v41  ;;  %v399_v50 = vunpack.c.0.s8 %v398_v44 }
 0x1d7   :  { %v400_v51 = vunpack.c.1.s8 %v398_v44  ;;  %v401_v52 = vunpack.c.2.s8 %v398_v44  ;;  %953 = vmatpush3.bf16.msra.mxu1 %v952_v45  ;;  %960 = vmatpush3.bf16.msra.mxu0 %v959_v46 }
 0x1d8   :  { %v220_v53 = vpack.c.b8 %v219_v47, %v219_v47  ;;  %v222_v54 = vpack.c.b8 %v221_v48, %v221_v48  ;;  %v224_v55 = vpack.c.b8 %v223_v49, %v223_v49  ;;  %v402_v56 = vpack.c.b16 %v399_v50, %v399_v50 }
 0x1d9   :  { %v404_v57 = vpack.c.b16 %v400_v51, %v400_v51  ;;  %v406_v58 = vpack.c.b16 %v401_v52, %v401_v52 }
 0x1da   :  { %225 = vst [vmem:[#allocation5] sm:$0x3] %v220_v53  ;;  %226 = vst [vmem:[#allocation5 + $0x2] sm:$0x3] %v222_v54  ;;  %v403_v59 = vpack.c.b8 %v402_v56, %v402_v56  ;;  %905 = vmatmul.mubr.msk.f32.vlgmr.msra.gmra.mrb[10].mxu1 %vm38_vm0, %v1078_v15  ;;  %925 = vmatmul.mubr.msk.f32.vlgmr.msra.gmra.mrb[10].mxu0 %vm38_vm0, %v1078_v15 }
 0x1db   :  { %227 = vst [vmem:[#allocation5 + $0x4] sm:$0x3] %v224_v55  ;;  %v405_v60 = vpack.c.b8 %v404_v57, %v404_v57  ;;  %v407_v61 = vpack.c.b8 %v406_v58, %v406_v58  ;;  %907 = vmatprep.mubr.msk.f32.mxu1 %vm1023_vm1, %v1024_v8  ;;  %927 = vmatprep.mubr.msk.f32.mxu0 %vm1023_vm1, %v1024_v8 }
 0x1dc   :  { %409 = vst [vmem:[#allocation5 + $0x6] sm:$0x3] %v403_v59 }
 0x1dd   :  { %410 = vst [vmem:[#allocation5 + $0x8] sm:$0x3] %v405_v60  ;;  %411 = vst [vmem:[#allocation5 + $0xa] sm:$0x3] %v407_v61 }
 0x1de   :  { %908 = vmatmul.mubr.msk.f32.gmra.mrb[12].mxu1 %vm38_vm0, %v1087_v16  ;;  %928 = vmatmul.mubr.msk.f32.gmra.mrb[12].mxu0 %vm38_vm0, %v1087_v16 }
 0x1df   :  { %910 = vmatprep.mubr.msk.f32.mxu1 %vm1023_vm1, %v1024_v8  ;;  %930 = vmatprep.mubr.msk.f32.mxu0 %vm1023_vm1, %v1024_v8 }
 0x1e2   :  { %911 = vmatmul.mubr.msk.f32.gmra.mrb[14].mxu1 %vm38_vm0, %v1104_v17  ;;  %931 = vmatmul.mubr.msk.f32.gmra.mrb[14].mxu0 %vm38_vm0, %v1104_v17 }
 0x2ad   :  { %v562_v62 = vpop.f32.mrb[10].mxu1  ;;  %v746_v63 = vpop.f32.mrb[10].mxu0 }
 0x2ae   :  { %v906_v0 = vpop.f32.mrb[11].mxu1  ;;  %v926_v1 = vpop.f32.mrb[11].mxu0  ;;  %vm576_vm14 = vcmp.gt.f32.partialorder %v562_v62, 0.0  ;;  %vm760_vm3 = vcmp.gt.f32.partialorder %v746_v63, 0.0 }
 0x2b1   :  { %v567_v2 = vpop.f32.mrb[12].mxu1  ;;  %v751_v3 = vpop.f32.mrb[12].mxu0 }
 0x2b2   :  { %vm577_vm15 = vcmp.gt.f32.partialorder %v567_v2, 0.0  ;;  %vm761_vm2 = vcmp.gt.f32.partialorder %v751_v3, 0.0  ;;  %v909_v4 = vpop.f32.mrb[13].mxu1  ;;  %v929_v5 = vpop.f32.mrb[13].mxu0 }
 0x2b3   :  { %vm579_vm4 = vmpackc.low %vm577_vm15, %vm576_vm14 }
 0x2b4   :  { %vm1146_vm1 = vmpackc.low %vm761_vm2, %vm760_vm3 }
 0x2b5   :  { %v572_v7 = vpop.f32.mrb[14].mxu1  ;;  %v756_v8 = vpop.f32.mrb[14].mxu0 }
 0x2b6   :  { %vm578_vm0 = vcmp.gt.f32.partialorder %v572_v7, 0.0  ;;  %vm762_vm5 = vcmp.gt.f32.partialorder %v756_v8, 0.0  ;;  %v912_v9 = vpop.f32.mrb[15].mxu1  ;;  %v932_v10 = vpop.f32.mrb[15].mxu0 }
 0x2b7   :  { %vm580_vm6 = vmpackc.low %vm578_vm0, %vm578_vm0 }
 0x2b8   :  { %vm581_vm7 = vmpackc.even %vm580_vm6, %vm579_vm4 }
 0x2b9   :  { %v582_v11 = vsel %vm581_vm7, 16843009, %v1025_v35  ;;  %vm764_vm8 = vmpackc.low %vm762_vm5, %vm762_vm5 }
 0x2ba   :  { %v583_v12 = vunpack.c.0.s8 %v582_v11  ;;  %v584_v13 = vunpack.c.1.s8 %v582_v11  ;;  %v585_v14 = vunpack.c.2.s8 %v582_v11  ;;  %vm765_vm9 = vmpackc.even %vm764_vm8, %vm1146_vm1 }
 0x2bb   :  { %v766_v15 = vsel %vm765_vm9, 16843009, %v1025_v35 }
 0x2bc   :  { %v586_v16 = vpack.c.b16 %v583_v12, %v583_v12  ;;  %v588_v17 = vpack.c.b16 %v584_v13, %v584_v13  ;;  %v590_v18 = vpack.c.b16 %v585_v14, %v585_v14  ;;  %v767_v19 = vunpack.c.0.s8 %v766_v15 }
 0x2bd   :  { %v768_v20 = vunpack.c.1.s8 %v766_v15  ;;  %v769_v21 = vunpack.c.2.s8 %v766_v15 }
 0x2be   :  { %v587_v22 = vpack.c.b8 %v586_v16, %v586_v16  ;;  %v589_v23 = vpack.c.b8 %v588_v17, %v588_v17  ;;  %v591_v24 = vpack.c.b8 %v590_v18, %v590_v18  ;;  %v770_v25 = vpack.c.b16 %v767_v19, %v767_v19 }
 0x2bf   :  { %v772_v26 = vpack.c.b16 %v768_v20, %v768_v20  ;;  %v774_v27 = vpack.c.b16 %v769_v21, %v769_v21 }
 0x2c0   :  { %593 = vst [vmem:[#allocation5 + $0xc] sm:$0x3] %v587_v22  ;;  %594 = vst [vmem:[#allocation5 + $0xe] sm:$0x3] %v589_v23  ;;  %v771_v28 = vpack.c.b8 %v770_v25, %v770_v25 }
 0x2c1   :  { %595 = vst [vmem:[#allocation5 + $0x10] sm:$0x3] %v591_v24  ;;  %v773_v29 = vpack.c.b8 %v772_v26, %v772_v26  ;;  %v775_v30 = vpack.c.b8 %v774_v27, %v774_v27 }
 0x2c2   :  { %777 = vst [vmem:[#allocation5 + $0x12] sm:$0x3] %v771_v28 }
 0x2c3   :  { %778 = vst [vmem:[#allocation5 + $0x14] sm:$0x3] %v773_v29  ;;  %779 = vst [vmem:[#allocation5 + $0x16] sm:$0x3] %v775_v30 }
 0x2c4   :  { %1004 = shalt.err (!%p1001_p12)
}
 0x2c5   :  { %s1005_s11 = scalar_lea.hbm %s1169_s3, 384 }
 0x2c6   :  { %p1006_p13 = scmp.ne.s32.totalorder %s1169_s3, %s1005_s11  ;;  %p1009_p0 = scmp.lt.u32.totalorder %s1005_s11, %s1169_s3 }
 0x2c8   :  { %p1011_p1 = pnand %p1009_p0, %p1006_p13 }
 0x2ca   :  { %1014 = shalt.err (!%p1011_p1)
}
 0x2cb   :  { %s1027_s16 = smov 32   ;;  %s1028_s17 = smov 2  }
 0x2cc   :  { %791 = dma.vmem_to_hbm [thread:$0]  %s786_s7, 384, %s1169_s3, [#allocation4], %s1027_s16, %s1027_s16, %s1028_s17  }
 0x2cd   :  { %1017 = dma.done.wait [#allocation4], 384  }
 0x2ce   :  { %1018 = vsyncadd [#allocation4], 4294966912 }
 0x2cf   :  { %795 = vsyncpa [#allocation3], 1 }
 0x2d0   :  { %796 = vsyncpa [#allocation4], 1 }

</bundles_post_ra>
